<compile_context>
chip_gen: v7x
topology: tpu7x:2x2x1
jax: 0.10.0
libtpu: 0.0.40
codegen_flags: <defaults>
</compile_context>

<pallas_src>
import functools

import jax
import jax.numpy as jnp
from jax import lax
from jax.experimental import pallas as pl
from jax.experimental.pallas import tpu as pltpu

STATE_DIM = 3      # pendulum observation dim
ACTION_DIM = 1
IN_DIM = STATE_DIM + ACTION_DIM
H1, H2, OUT = 32, 16, 1


def critic_kernel(x_ref, w1_ref, b1_ref, w2_ref, b2_ref, w3_ref, b3_ref,
                  q_ref, *, chunk):
    """Fused transposed 3-layer MLP on one batch tile (batch on the lane axis)."""
    w1 = w1_ref[...]            # (H1, IN_DIM)
    b1 = b1_ref[...]            # (H1, 1)
    w2 = w2_ref[...]            # (H2, H1)
    b2 = b2_ref[...]            # (H2, 1)
    w3 = w3_ref[...]            # (OUT, H2)
    b3 = b3_ref[0, 0]           # scalar (SMEM)

    def mlp(x):                 # (IN_DIM, c) -> (OUT, c); all three layers on MXU
        h1 = jnp.maximum(
            jnp.dot(w1, x, preferred_element_type=jnp.float32) + b1, 0.0)
        h2 = jnp.maximum(
            jnp.dot(w2, h1, preferred_element_type=jnp.float32) + b2, 0.0)
        return jnp.dot(w3, h2, preferred_element_type=jnp.float32) + b3

    tb = x_ref.shape[-1]
    if chunk is None or tb <= chunk or tb % chunk != 0:
        # Small / single tile: one shot.
        q_ref[...] = mlp(x_ref[...]).astype(q_ref.dtype)
    else:
        # Large tile: lane-aligned chunks keep the h1/h2 chain small while the
        # big outer tile still amortizes per-grid-step / DMA overhead.
        n_chunks = tb // chunk

        def body(c, carry):
            off = pl.multiple_of(c * chunk, chunk)
            x = x_ref[:, pl.ds(off, chunk)]
            q_ref[:, pl.ds(off, chunk)] = mlp(x).astype(q_ref.dtype)
            return carry

        lax.fori_loop(0, n_chunks, body, 0,
                      unroll=True if n_chunks <= 16 else 8)


def _round_up(x, m):
    return -(-x // m) * m


@functools.partial(jax.jit, static_argnames=("tile_b", "chunk"))
def critic_forward(state, action, params, tile_b=16384, chunk=512):
    """state: (B, STATE_DIM), action: (B, ACTION_DIM) -> q: (B, 1)."""
    w1, b1, w2, b2, w3, b3 = params
    B = state.shape[0]

    # Single fused glue op: concat + transpose, so batch rides the 128-wide
    # lane axis and fc1 becomes one (H1, IN_DIM) @ (IN_DIM, T) MXU matmul.
    # TODO(synk): if the producer can emit (IN_DIM, B) directly, this HBM pass disappears.
    xT = jnp.concatenate([state, action], axis=1).T        # (IN_DIM, B)

    if B <= min(tile_b, 1024):
        tb = B                  # single tile; full-extent lane block is legal
    else:
        # >= 2 grid steps so the "parallel" axis engages both v7x TensorCores;
        # tb is a multiple of 128, so ragged (unpadded) tails are legal.
        tb = min(tile_b, _round_up(pl.cdiv(B, 2), 128))
    grid = (pl.cdiv(B, tb),)

    resident = lambda a: pl.BlockSpec(a.shape, lambda i: (0, 0))  # VMEM-resident

    qt = pl.pallas_call(
        functools.partial(critic_kernel, chunk=chunk),
        out_shape=jax.ShapeDtypeStruct((OUT, B), jnp.float32),
        grid=grid,
        in_specs=[
            pl.BlockSpec((IN_DIM, tb), lambda i: (0, i)),          # x^T batch tile
            resident(w1), resident(b1),
            resident(w2), resident(b2),
            resident(w3),
            pl.BlockSpec(memory_space=pltpu.MemorySpace.SMEM),     # b3 scalar
        ],
        out_specs=pl.BlockSpec((OUT, tb), lambda i: (0, i)),
        compiler_params=pltpu.CompilerParams(
            dimension_semantics=("parallel",),                     # v7x: both TCs
        ),
    )(xT, w1, b1, w2, b2, w3, b3)

    # (1, B) -> (B, 1) is a free reshape (same row-major bytes).
    return qt.reshape(B, OUT)


def init_params(key):
    """PyTorch nn.Linear default init (U(-k, k), k = 1/sqrt(fan_in)), stored in
    the (out, in) layout the transposed kernel consumes; biases as (out, 1)
    columns; b3 as a (1, 1) scalar for SMEM."""
    def linear(k, fan_in, fan_out):
        kw, kb = jax.random.split(k)
        bound = 1.0 / jnp.sqrt(float(fan_in))
        w = jax.random.uniform(kw, (fan_out, fan_in), jnp.float32, -bound, bound)
        b = jax.random.uniform(kb, (fan_out, 1), jnp.float32, -bound, bound)
        return w, b

    k1, k2, k3 = jax.random.split(key, 3)
    w1, b1 = linear(k1, IN_DIM, H1)
    w2, b2 = linear(k2, H1, H2)
    w3, b3 = linear(k3, H2, OUT)
    return (w1, b1, w2, b2, w3, b3)


def critic_ref(state, action, params):
    """Pure-JAX reference mirroring the PyTorch module."""
    w1, b1, w2, b2, w3, b3 = params
    x = jnp.concatenate([state, action], axis=1)
    h = jnp.maximum(x @ w1.T + b1.T, 0.0)
    h = jnp.maximum(h @ w2.T + b2.T, 0.0)
    return h @ w3.T + b3.T


if __name__ == "__main__":
    key = jax.random.PRNGKey(0)
    kp, ks, ka = jax.random.split(key, 3)
    params = init_params(kp)

    # Small shapes implied by the module (pendulum: state_dim=3, action_dim=1).
    B = 8
    state = jax.random.normal(ks, (B, STATE_DIM), jnp.float32)
    action = jax.random.normal(ka, (B, ACTION_DIM), jnp.float32)
    q = jax.block_until_ready(critic_forward(state, action, params))
    assert q.shape == (B, OUT)
    assert jnp.allclose(q, critic_ref(state, action, params), rtol=1e-3, atol=1e-4)

    # Multi-step grid with a ragged (unpadded) last block.
    ks2, ka2 = jax.random.split(jax.random.PRNGKey(1))
    B2 = 300
    state2 = jax.random.normal(ks2, (B2, STATE_DIM), jnp.float32)
    action2 = jax.random.normal(ka2, (B2, ACTION_DIM), jnp.float32)
    q2 = jax.block_until_ready(critic_forward(state2, action2, params, tile_b=128))
    assert q2.shape == (B2, OUT)
    assert jnp.allclose(q2, critic_ref(state2, action2, params), rtol=1e-3, atol=1e-4)

    # Larger batch: >= 2 parallel grid steps + in-kernel lane chunking.
    ks3, ka3 = jax.random.split(jax.random.PRNGKey(2))
    B3 = 2048
    state3 = jax.random.normal(ks3, (B3, STATE_DIM), jnp.float32)
    action3 = jax.random.normal(ka3, (B3, ACTION_DIM), jnp.float32)
    q3 = jax.block_until_ready(critic_forward(state3, action3, params))
    assert q3.shape == (B3, OUT)
    assert jnp.allclose(q3, critic_ref(state3, action3, params), rtol=1e-3, atol=1e-4)

    print("KERNEL_OK")
</pallas_src>

<mosaic_0001>
module attributes {stable_mosaic.version = 11 : i64} {
  func.func @critic_kernel(%arg0: i32, %arg1: memref<4x8xf32, #tpu.memory_space<vmem>>, %arg2: memref<32x4xf32, #tpu.memory_space<vmem>>, %arg3: memref<32x1xf32, #tpu.memory_space<vmem>>, %arg4: memref<16x32xf32, #tpu.memory_space<vmem>>, %arg5: memref<16x1xf32, #tpu.memory_space<vmem>>, %arg6: memref<1x16xf32, #tpu.memory_space<vmem>>, %arg7: memref<1x1xf32, #tpu.memory_space<smem>>, %arg8: memref<1x8xf32, #tpu.memory_space<vmem>>) attributes {dimension_semantics = [#tpu.dimension_semantics<parallel>], iteration_bounds = array<i64: 1>, scalar_prefetch = 0 : i64, scratch_operands = 0 : i64, tpu.core_type = #tpu.core_type<tc>, window_params = [{transform_indices = @transform_0, window_bounds = array<i64: 4, 8>}, {pipeline_mode = #tpu.pipeline_mode<synchronous>, transform_indices = @transform_1, window_bounds = array<i64: 32, 4>}, {pipeline_mode = #tpu.pipeline_mode<synchronous>, transform_indices = @transform_2, window_bounds = array<i64: 32, 1>}, {pipeline_mode = #tpu.pipeline_mode<synchronous>, transform_indices = @transform_3, window_bounds = array<i64: 16, 32>}, {pipeline_mode = #tpu.pipeline_mode<synchronous>, transform_indices = @transform_4, window_bounds = array<i64: 16, 1>}, {pipeline_mode = #tpu.pipeline_mode<synchronous>, transform_indices = @transform_5, window_bounds = array<i64: 1, 16>}, {transform_indices = @transform_6, window_bounds = array<i64: 1, 1>}, {transform_indices = @transform_7, window_bounds = array<i64: 1, 8>}]} {
    %c0 = arith.constant 0 : index
    %c0_0 = arith.constant 0 : index
    %0 = vector.load %arg2[%c0, %c0_0] : memref<32x4xf32, #tpu.memory_space<vmem>>, vector<32x4xf32>
    %c0_1 = arith.constant 0 : index
    %c0_2 = arith.constant 0 : index
    %1 = vector.load %arg3[%c0_1, %c0_2] : memref<32x1xf32, #tpu.memory_space<vmem>>, vector<32x1xf32>
    %c0_3 = arith.constant 0 : index
    %c0_4 = arith.constant 0 : index
    %2 = vector.load %arg4[%c0_3, %c0_4] : memref<16x32xf32, #tpu.memory_space<vmem>>, vector<16x32xf32>
    %c0_5 = arith.constant 0 : index
    %c0_6 = arith.constant 0 : index
    %3 = vector.load %arg5[%c0_5, %c0_6] : memref<16x1xf32, #tpu.memory_space<vmem>>, vector<16x1xf32>
    %c0_7 = arith.constant 0 : index
    %c0_8 = arith.constant 0 : index
    %4 = vector.load %arg6[%c0_7, %c0_8] : memref<1x16xf32, #tpu.memory_space<vmem>>, vector<1x16xf32>
    %c0_9 = arith.constant 0 : index
    %c0_10 = arith.constant 0 : index
    %5 = memref.load %arg7[%c0_9, %c0_10] : memref<1x1xf32, #tpu.memory_space<smem>>
    %c0_11 = arith.constant 0 : index
    %c0_12 = arith.constant 0 : index
    %6 = vector.load %arg1[%c0_11, %c0_12] : memref<4x8xf32, #tpu.memory_space<vmem>>, vector<4x8xf32>
    %cst = arith.constant dense<0.000000e+00> : vector<32x8xf32>
    %7 = tpu.matmul %0, %6, %cst {dimension_numbers = #tpu.dot_dimension_numbers<[1], [0], [0], [1], [0, 0, 1, 1], [], []>} : vector<32x4xf32>, vector<4x8xf32>, vector<32x8xf32> -> vector<32x8xf32>
    %8 = vector.broadcast %1 : vector<32x1xf32> to vector<32x8xf32>
    %9 = arith.addf %7, %8 : vector<32x8xf32>
    %cst_13 = arith.constant 0.000000e+00 : f32
    %10 = vector.broadcast %cst_13 : f32 to vector<32x8xf32>
    %11 = arith.maximumf %9, %10 : vector<32x8xf32>
    %cst_14 = arith.constant dense<0.000000e+00> : vector<16x8xf32>
    %12 = tpu.matmul %2, %11, %cst_14 {dimension_numbers = #tpu.dot_dimension_numbers<[1], [0], [0], [1], [0, 0, 1, 1], [], []>} : vector<16x32xf32>, vector<32x8xf32>, vector<16x8xf32> -> vector<16x8xf32>
    %13 = vector.broadcast %3 : vector<16x1xf32> to vector<16x8xf32>
    %14 = arith.addf %12, %13 : vector<16x8xf32>
    %cst_15 = arith.constant 0.000000e+00 : f32
    %15 = vector.broadcast %cst_15 : f32 to vector<16x8xf32>
    %16 = arith.maximumf %14, %15 : vector<16x8xf32>
    %cst_16 = arith.constant dense<0.000000e+00> : vector<1x8xf32>
    %17 = tpu.matmul %4, %16, %cst_16 {dimension_numbers = #tpu.dot_dimension_numbers<[1], [0], [0], [1], [0, 0, 1, 1], [], []>} : vector<1x16xf32>, vector<16x8xf32>, vector<1x8xf32> -> vector<1x8xf32>
    %18 = vector.broadcast %5 : f32 to vector<1x8xf32>
    %19 = arith.addf %17, %18 : vector<1x8xf32>
    %c0_17 = arith.constant 0 : index
    %c0_18 = arith.constant 0 : index
    %20 = vector.load %arg8[%c0_17, %c0_18] : memref<1x8xf32, #tpu.memory_space<vmem>>, vector<1x8xf32>
    tpu.vector_store %arg8[%c0_17, %c0_18], %19 {strides = array<i32>} : memref<1x8xf32, #tpu.memory_space<vmem>>, vector<1x8xf32>,
    return
  }
  func.func @transform_0(%arg0: i32) -> (i32, i32) {
    %c0_i32 = arith.constant 0 : i32
    %c0_i32_0 = arith.constant 0 : i32
    return %c0_i32, %arg0 : i32, i32
  }
  func.func @transform_1(%arg0: i32) -> (i32, i32) {
    %c0_i32 = arith.constant 0 : i32
    %c0_i32_0 = arith.constant 0 : i32
    %c0_i32_1 = arith.constant 0 : i32
    return %c0_i32, %c0_i32_0 : i32, i32
  }
  func.func @transform_2(%arg0: i32) -> (i32, i32) {
    %c0_i32 = arith.constant 0 : i32
    %c0_i32_0 = arith.constant 0 : i32
    %c0_i32_1 = arith.constant 0 : i32
    return %c0_i32, %c0_i32_0 : i32, i32
  }
  func.func @transform_3(%arg0: i32) -> (i32, i32) {
    %c0_i32 = arith.constant 0 : i32
    %c0_i32_0 = arith.constant 0 : i32
    %c0_i32_1 = arith.constant 0 : i32
    return %c0_i32, %c0_i32_0 : i32, i32
  }
  func.func @transform_4(%arg0: i32) -> (i32, i32) {
    %c0_i32 = arith.constant 0 : i32
    %c0_i32_0 = arith.constant 0 : i32
    %c0_i32_1 = arith.constant 0 : i32
    return %c0_i32, %c0_i32_0 : i32, i32
  }
  func.func @transform_5(%arg0: i32) -> (i32, i32) {
    %c0_i32 = arith.constant 0 : i32
    %c0_i32_0 = arith.constant 0 : i32
    %c0_i32_1 = arith.constant 0 : i32
    return %c0_i32, %c0_i32_0 : i32, i32
  }
  func.func @transform_6(%arg0: i32) -> (i32, i32) {
    %c0_i32 = arith.constant 0 : i32
    %c0_i32_0 = arith.constant 0 : i32
    %c0_i32_1 = arith.constant 0 : i32
    return %c0_i32, %c0_i32_0 : i32, i32
  }
  func.func @transform_7(%arg0: i32) -> (i32, i32) {
    %c0_i32 = arith.constant 0 : i32
    %c0_i32_0 = arith.constant 0 : i32
    return %c0_i32, %arg0 : i32, i32
  }
}

</mosaic_0001>

<bundles_post_ra>
// kernel: critic_forward.1
= control target key start
LH: loop header
LB: loop body
LE: loop exit
PB: predicated region body
PF: predicated region fallthrough
CT: control target
= control target key end

     0   :  { %vm76_vm0 = vcmask 1043456   ;;  %vm63_vm1 = vcmask 31744   ;;  %v444_v5 = vmov 0   ;;  %s552_s0 = inlined_call_operand.vmem [shape: f32[4,8], index: 0, kind: input, shape index: {}]   ;;  %s553_s1 = inlined_call_operand.vmem [shape: f32[32,4], index: 1, kind: input, shape index: {}]   ;;  %s554_s2 = inlined_call_operand.vmem [shape: f32[32,1], index: 2, kind: input, shape index: {}]   ;;  %s555_s3 = inlined_call_operand.vmem [shape: f32[16,32], index: 3, kind: input, shape index: {}]   ;;  %s556_s4 = inlined_call_operand.vmem [shape: f32[16,1], index: 4, kind: input, shape index: {}]   ;;  %s557_s5 = inlined_call_operand.vmem [shape: f32[1,16], index: 5, kind: input, shape index: {}]   ;;  %s558_s6 = inlined_call_operand.<no memory space> [shape: f32[1,1], index: 6, kind: input, shape index: {}]   ;;  %s559_s7 = inlined_call_operand.hbm [shape: f32[1,8], index: 7, kind: output, shape index: {}]  }
   0x1   :  { %v42_v0 = vld [vmem:[%s552_s0] sm:$0xf]  ;;  %v29_v2 = vld [vmem:[%s553_s1 + $0x8] sm:$0xff]  ;;  %v30_v3 = vld [vmem:[%s553_s1 + $0x10] sm:$0xff]  ;;  %418 = vset.pattern.permute.xlu0 %v444_v5 }
   0x2   :  { %v28_v1 = vld [vmem:[%s553_s1] sm:$0xff]  ;;  %376 = vmatprep.subr.msk.mxu0 %vm76_vm0, %v42_v0  ;;  %v34_v6 = vld [vmem:[%s554_s2 + $0x10] sm:$0xff] }
   0x3   :  { %378 = vmatprep.mubr.msk.f32.mxu0 %vm63_vm1, %v28_v1  ;;  %v32_v4 = vld [vmem:[%s554_s2] sm:$0xff]  ;;  %377 = vmatpush3.msk.msra.mxu0 %vm76_vm0, %v42_v0 }
   0x4   :  { %379 = vmatmul.mubr.msk.f32.vlgmr.msra.gmra.mrb[0].mxu0 %vm63_vm1, %v29_v2  ;;  %45 = vperm.xlu0 %418, %v32_v4  }
   0x5   :  { %13 = vsyncpa [#allocation4], 0  ;;  %381 = vmatprep.mubr.msk.f32.mxu0 %vm63_vm1, %v30_v3  ;;  %v31_v7 = vld [vmem:[%s553_s1 + $0x18] sm:$0xff]  ;;  %419 = vset.pattern.permute.xlu1 %v444_v5  ;;  %v33_v8 = vld [vmem:[%s554_s2 + $0x8] sm:$0xff]  ;;  %vm179_vm2 = vcmask 261120   ;;  %v445_v32 = vmov 0.0|0.0   ;;  %v263_v44 = vstv %s558_s6 }
   0x6   :  { %55 = vperm.xlu1 %419, %v34_v6   ;;  %v35_v9 = vld [vmem:[%s554_s2 + $0x18] sm:$0xff]  ;;  %v38_v10 = vld [vmem:[%s556_s4] sm:$0xff]  ;;  %v39_v11 = vld [vmem:[%s556_s4 + $0x8] sm:$0xff]  ;;  %410 = vmatprep.subr.bf16.mxu0 %v445_v32  ;;  %vm446_vm3 = vmmov 0   ;;  %v447_v33 = vmov 0.0   ;;  %vm264_vm4 = vcmask 130048  }
   0x7   :  { %v36_v12 = vld [vmem:[%s555_s3] sm:$0xff]  ;;  %v37_v31 = vld [vmem:[%s555_s3 + $0x8] sm:$0xff]  ;;  %s448_s26 = smov [#allocation3]   ;;  %vm338_vm5 = vcmask 57344  }
   0x8   :  { %382 = vmatmul.mubr.msk.f32.gmra.mrb[2].mxu0 %vm63_vm1, %v31_v7  ;;  %50 = vperm.xlu0 %418, %v33_v8   ;;  %v40_v43 = vld [vmem:[%s557_s5] sm:$0x1]  ;;  %s346_s27 = sshll.u32 %s448_s26, 4  ;;  %s347_s27 = int_to_ptr.vmem [resolvable:$true] %s346_s27 }
   0x9   :  { %392 = vmatprep.mubr.msk.f32.mxu1 %vm179_vm2, %v36_v12  ;;  %399 = vmatprep.mubr.msk.f32.mxu0 %vm446_vm3, %v447_v33  ;;  %s420_s28 = scalar_lea.vmem %s347_s27, 16  ;;  %s424_s29 = scalar_lea.vmem %s347_s27, 32 }
   0xa   :  { %60 = vperm.xlu1 %419, %v35_v9   ;;  %p421_p0 = scmp.ne.s32.totalorder %s347_s27, %s420_s28  ;;  %p425_p1 = scmp.lt.s32.totalorder %s347_s27, %s347_s27 }
   0xb   :  { %p426_p2 = scmp.lt.s32.totalorder %s424_s29, %s420_s28 }
   0xc   :  { %171 = vperm.xlu0 %418, %v38_v10  }
   0xd   :  { %p427_p3 = por %p426_p2, %p425_p1 }
   0xe   :  { %176 = vperm.xlu1 %419, %v39_v11  }
   0xf   :  { %p428_p4 = pnand %p427_p3, %p421_p0 }
  0x83   :  { %v46_v13 = vpop.permute.xlu0 %45 }
  0x85   :  { %v56_v14 = vpop.permute.xlu1 %55 }
  0x87   :  { %v51_v15 = vpop.permute.xlu0 %50 }
  0x89   :  { %v61_v21 = vpop.permute.xlu1 %60 }
  0x8b   :  { %v172_v36 = vpop.permute.xlu0 %171 }
  0x8d   :  { %v177_v34 = vpop.permute.xlu1 %176 }
  0xd7   :  { %v380_v16 = vpop.f32.mrb[0].mxu0 }
  0xd8   :  { %v152_v17 = vadd.f32 %v380_v16, %v51_v15  ;;  %v146_v18 = vpop.f32.mrb[1].mxu0 }
  0xd9   :  { %v147_v19 = vadd.f32 %v146_v18, %v46_v13 }
  0xda   :  { %v166_v20 = vmax.f32 %v152_v17, 0.0 }
  0xdb   :  { %v165_v22 = vmax.f32 %v147_v19, 0.0  ;;  %v383_v23 = vpop.f32.mrb[2].mxu0 }
  0xdc   :  { %v162_v24 = vadd.f32 %v383_v23, %v61_v21  ;;  %v156_v25 = vpop.f32.mrb[3].mxu0 }
  0xdd   :  { %v157_v26 = vadd.f32 %v156_v25, %v56_v14  ;;  %v402_v27 = vpack.c.bf16 %v166_v20, %v165_v22 }
  0xde   :  { %v168_v28 = vmax.f32 %v162_v24, 0.0 }
  0xdf   :  { %v167_v29 = vmax.f32 %v157_v26, 0.0  ;;  %403 = vmatprep.subr.bf16.mxu1 %v402_v27 }
  0xe0   :  { %405 = vmatpush3.bf16.msra.mxu1 %v402_v27 }
  0xe1   :  { %v406_v30 = vpack.c.bf16 %v168_v28, %v167_v29 }
  0xe3   :  { %407 = vmatprep.subr.bf16.mxu1 %v406_v30 }
  0xe4   :  { %409 = vmatpush3.bf16.msra.mxu1 %v406_v30 }
  0xe7   :  { %393 = vmatmul.mubr.msk.f32.vlgmr.msra.gmra.mrb[0].mxu1 %vm179_vm2, %v37_v31 }
 0x1ba   :  { %v394_v35 = vpop.f32.mrb[0].mxu1 }
 0x1bb   :  { %v258_v37 = vadd.f32 %v394_v35, %v177_v34  ;;  %v252_v38 = vpop.f32.mrb[1].mxu1 }
 0x1bc   :  { %v253_v39 = vadd.f32 %v252_v38, %v172_v36 }
 0x1bd   :  { %v262_v40 = vmax.f32 %v258_v37, 0.0 }
 0x1be   :  { %v261_v41 = vmax.f32 %v253_v39, 0.0 }
 0x1c0   :  { %v411_v42 = vpack.c.bf16 %v262_v40, %v261_v41 }
 0x1c2   :  { %412 = vmatpush3.bf16.msra.mxu0 %v411_v42 }
 0x1c5   :  { %400 = vmatmul.mubr.msk.f32.vlgmr.msra.gmra.mrb[4].mxu0 %vm264_vm4, %v40_v43 }
 0x298   :  { %v334_v45 = vpop.f32.mrb[4].mxu0 }
 0x299   :  { %v335_v46 = vadd.f32 %v334_v45, %v263_v44  ;;  %v401_v47 = vpop.f32.mrb[5].mxu0 }
 0x29b   :  { %339 = vst.msk [vmem:[#allocation3] sm:$0x1] %vm338_vm5, %v335_v46 }
 0x29c   :  { %431 = shalt.err (!%p428_p4)
}
 0x29d   :  { %s432_s6 = scalar_lea.hbm %s559_s7, 16 }
 0x29e   :  { %p433_p5 = scmp.ne.s32.totalorder %s559_s7, %s432_s6  ;;  %p436_p6 = scmp.lt.u32.totalorder %s432_s6, %s559_s7 }
 0x2a0   :  { %p438_p7 = pnand %p436_p6, %p433_p5 }
 0x2a2   :  { %441 = shalt.err (!%p438_p7)
}
 0x2a3   :  { %349 = dma.vmem_to_hbm [thread:$0]  %s347_s27, 16, %s559_s7, [#allocation4]  }
 0x2a4   :  { %442 = dma.done.wait [#allocation4], 16  }
 0x2a5   :  { %443 = vsyncadd [#allocation4], 4294967280 }
 0x2a6   :  { %353 = vsyncpa [#allocation4], 1 }

</bundles_post_ra>
